<compile_context>
chip_gen: v5e
topology: v5e:2x2
jax: 0.10.0
libtpu: 0.0.40
codegen_flags: <defaults>
</compile_context>

<pallas_src>
import jax
import jax.numpy as jnp
from jax.experimental import pallas as pl
from jax.experimental.pallas import tpu as pltpu

EPS = 1e-5


def _vmem_capacity_bytes():
    cap = 64 * 1024 * 1024            # conservative default (v7x per-TensorCore)
    try:
        info = pltpu.get_tpu_info()
        cap = int(getattr(info, "vmem_capacity_bytes", cap))
    except Exception:
        pass
    return cap


def _select_channel_tile(C, g, N, L, itemsize, vmem_budget):
    """Largest channel tile whose pipelined blocks + fp32 temporaries fit VMEM."""
    legal = [ct for ct in range(1, C + 1)
             if C % ct == 0 and ((ct * g) % 8 == 0 or ct == C)]

    def block_bytes(ct):
        return N * ct * g * L * itemsize

    def vmem_need(ct):
        rows = ct * g
        temps = 8 * rows * L * 4          # psum/pdev/mean/a/b lanes + chunk temps
        params = 4 * rows * 128 * 4       # gamma/beta blocks (lane-padded), 2x buffered
        return 4 * block_bytes(ct) + temps + params   # 2x double-buffered in + out

    fitting = [ct for ct in legal if vmem_need(ct) <= vmem_budget]
    if not fitting:
        # TODO(synk): also tile the batch axis (reduction grid axis + accumulator
        # scratch) for extreme N where even the minimal channel tile overflows VMEM.
        ct = min(legal)
        return ct, vmem_need(ct)
    # Prefer blocks in the ~<=8 MiB DMA sweet spot, then the largest such tile.
    sweet = [ct for ct in fitting if block_bytes(ct) <= 8 * 1024 * 1024]
    pool = sweet if sweet else fitting
    ct = max(pool)
    # Prefer >=2 grid points (pipeline overlap; keeps both v7x TensorCores busy).
    if C // ct < 2:
        multi = [c for c in pool if C // c >= 2]
        if multi:
            ct = max(multi)
    return ct, vmem_need(ct)


def slice_bn(x, gamma, beta, group):
    """x: (N, C, H, W). gamma, beta: (group*group, C). Training-mode SliceBN."""
    N, C, H, W = x.shape
    g = int(group)
    if H % g != 0 or W % g != 0:
        raise ValueError(f"H ({H}) and W ({W}) must be divisible by group ({g})")
    Hs, Ws = H // g, W // g
    L = Hs * W                          # lane axis: Hs folded into W (lane-dense)
    S = g * g
    m = N * Hs * Ws                     # elements per (slice, channel) statistic
    inv_m = 1.0 / float(m)
    itemsize = x.dtype.itemsize

    vmem_cap = _vmem_capacity_bytes()
    vmem_budget = (vmem_cap * 3) // 4            # ~48 MiB on v7x, ~96 MiB on v5e/v6e
    Ct, need = _select_channel_tile(C, g, N, L, itemsize, vmem_budget)
    rows = Ct * g                                # block rows: (channel, gi) pairs
    vmem_limit = int(min((vmem_cap * 9) // 10,
                         max(vmem_budget, need + 2 * 1024 * 1024)))

    # Free, contiguous view: row r = c*g + gi, lane l = hs*W + w.
    xr = x.reshape(N, C * g, L)
    # Tiny host-side rearrange of the affine params: (S, C) -> (C*g, g),
    # row r = c*g + gi, column gj  (matches the kernel's row/lane addressing).
    gamma_t = jnp.transpose(gamma.reshape(g, g, C), (2, 0, 1)).reshape(C * g, g)
    beta_t = jnp.transpose(beta.reshape(g, g, C), (2, 0, 1)).reshape(C * g, g)
    gamma_t = gamma_t.astype(jnp.float32)
    beta_t = beta_t.astype(jnp.float32)

    def kernel(x_ref, gamma_ref, beta_ref, o_ref):
        # x_ref/o_ref: (N, rows, L);  gamma_ref/beta_ref: (rows, g).
        unroll = N <= 8
        lane_in_w = jax.lax.broadcasted_iota(jnp.int32, (1, L), 1) % W

        # Pass 1 (chunked over N): per-lane sums -> per-(row, gj) means.
        def sum_body(n, acc):
            return acc + x_ref[n].astype(jnp.float32)
        psum = jax.lax.fori_loop(0, N, sum_body,
                                 jnp.zeros((rows, L), jnp.float32), unroll=unroll)

        masks, means = [], []
        mean_lane = jnp.zeros((rows, L), jnp.float32)
        for j in range(g):                       # g is a small static int
            mask = (lane_in_w >= j * Ws) & (lane_in_w < (j + 1) * Ws)   # (1, L)
            mean_j = jnp.sum(jnp.where(mask, psum, 0.0),
                             axis=-1, keepdims=True) * inv_m            # (rows, 1)
            masks.append(mask)
            means.append(mean_j)
            mean_lane = jnp.where(mask, mean_j, mean_lane)

        # Pass 2 (chunked over N): true two-pass variance (avoids E[x^2]-E[x]^2
        # cancellation); block is VMEM-resident so this costs no extra HBM traffic.
        def dev_body(n, acc):
            d = x_ref[n].astype(jnp.float32) - mean_lane
            return acc + d * d
        pdev = jax.lax.fori_loop(0, N, dev_body,
                                 jnp.zeros((rows, L), jnp.float32), unroll=unroll)

        gamma_full = gamma_ref[...]              # (rows, g) f32
        beta_full = beta_ref[...]
        a_lane = jnp.zeros((rows, L), jnp.float32)
        b_lane = jnp.zeros((rows, L), jnp.float32)
        for j in range(g):
            var_j = jnp.sum(jnp.where(masks[j], pdev, 0.0),
                            axis=-1, keepdims=True) * inv_m              # biased
            inv_std = jax.lax.rsqrt(var_j + EPS)
            a_j = gamma_full[:, j:j + 1] * inv_std                       # (rows, 1)
            b_j = beta_full[:, j:j + 1] - means[j] * a_j
            a_lane = jnp.where(masks[j], a_j, a_lane)
            b_lane = jnp.where(masks[j], b_j, b_lane)

        # Pass 3 (chunked over N): fused scale/shift, lane-dense stores.
        # a_lane/b_lane are hoisted (built once per block).
        def norm_body(n, carry):
            xn = x_ref[n].astype(jnp.float32)
            o_ref[n] = (a_lane * xn + b_lane).astype(o_ref.dtype)
            return carry
        jax.lax.fori_loop(0, N, norm_body, 0, unroll=unroll)

    cost = pl.CostEstimate(
        flops=int(6 * x.size),
        transcendentals=int(S * C),
        bytes_accessed=int(2 * x.size * itemsize + 4 * S * C * 4),
    )

    out = pl.pallas_call(
        kernel,
        out_shape=jax.ShapeDtypeStruct((N, C * g, L), x.dtype),
        grid_spec=pltpu.PrefetchScalarGridSpec(
            num_scalar_prefetch=0,
            grid=(C // Ct,),
            in_specs=[
                pl.BlockSpec((N, rows, L), lambda c: (0, c, 0)),
                pl.BlockSpec((rows, g), lambda c: (c, 0)),   # gamma columns per gi tile
                pl.BlockSpec((rows, g), lambda c: (c, 0)),   # beta columns
            ],
            out_specs=pl.BlockSpec((N, rows, L), lambda c: (0, c, 0)),
        ),
        compiler_params=pltpu.CompilerParams(
            dimension_semantics=("parallel",),
            vmem_limit_bytes=vmem_limit,
        ),
        cost_estimate=cost,
    )(xr, gamma_t, beta_t)

    # Free reshape back to (N, C, H, W).
    return out.reshape(N, C, H, W)


def slice_bn_reference(x, gamma, beta, group):
    """Pure-JAX reference matching PyTorch SliceBN in training mode."""
    N, C, H, W = x.shape
    g = group
    Hs, Ws = H // g, W // g
    xr = x.reshape(N, C, g, Hs, g, Ws)
    y = jnp.zeros_like(xr)
    for i in range(g):
        for j in range(g):
            s = xr[:, :, i, :, j, :]                              # (N, C, Hs, Ws)
            mean = jnp.mean(s, axis=(0, 2, 3), keepdims=True)
            var = jnp.mean((s - mean) ** 2, axis=(0, 2, 3), keepdims=True)
            gm = gamma[i * g + j].reshape(1, C, 1, 1)
            bt = beta[i * g + j].reshape(1, C, 1, 1)
            sn = gm * (s - mean) / jnp.sqrt(var + EPS) + bt
            y = y.at[:, :, i, :, j, :].set(sn)
    return y.reshape(N, C, H, W)


if __name__ == "__main__":
    key = jax.random.PRNGKey(0)
    N, C, H, W = 2, 4, 16, 16

    # Shift/scale so the two-pass variance path is exercised on non-centered data.
    x = 2.0 * jax.random.normal(key, (N, C, H, W), dtype=jnp.float32) + 3.0

    # Exercise both module branches (group > 1 and the group == 1 fast path).
    for group in (2, 1):
        S = group * group
        # Deterministic non-default per-slice affine params (one BatchNorm2d
        # weight/bias pair per slice) so the affine path is exercised.
        gamma = 1.0 + 0.05 * jnp.arange(S * C, dtype=jnp.float32).reshape(S, C)
        beta = 0.01 * jnp.arange(S * C, dtype=jnp.float32).reshape(S, C)

        y = jax.block_until_ready(slice_bn(x, gamma, beta, group))
        y_ref = slice_bn_reference(x, gamma, beta, group)
        assert y.shape == (N, C, H, W)
        assert jnp.allclose(y, y_ref, atol=1e-4, rtol=1e-4), f"mismatch (group={group})"

    print("KERNEL_OK")
</pallas_src>

<mosaic_0001>
module attributes {stable_mosaic.version = 11 : i64} {
  func.func @kernel(%arg0: i32, %arg1: memref<2x8x128xf32, #tpu.memory_space<vmem>>, %arg2: memref<8x2xf32, #tpu.memory_space<vmem>>, %arg3: memref<8x2xf32, #tpu.memory_space<vmem>>, %arg4: memref<2x8x128xf32, #tpu.memory_space<vmem>>) attributes {dimension_semantics = [#tpu.dimension_semantics<parallel>], iteration_bounds = array<i64: 1>, scalar_prefetch = 0 : i64, scratch_operands = 0 : i64, tpu.core_type = #tpu.core_type<tc>, window_params = [{transform_indices = @transform_0, window_bounds = array<i64: 2, 8, 128>}, {transform_indices = @transform_1, window_bounds = array<i64: 8, 2>}, {transform_indices = @transform_2, window_bounds = array<i64: 8, 2>}, {transform_indices = @transform_3, window_bounds = array<i64: 2, 8, 128>}]} {
    %0 = tpu.iota {dimensions = array<i32: 1>} : vector<1x128xi32>
    %c16_i32 = arith.constant 16 : i32
    %c0_i32 = arith.constant 0 : i32
    %1 = arith.cmpi eq, %c16_i32, %c0_i32 : i32
    %c1_i32 = arith.constant 1 : i32
    %2 = arith.select %1, %c1_i32, %c16_i32 : i32
    %3 = vector.broadcast %2 : i32 to vector<1x128xi32>
    %4 = arith.remsi %0, %3 : vector<1x128xi32>
    %c0_i32_0 = arith.constant 0 : i32
    %5 = vector.broadcast %c0_i32_0 : i32 to vector<1x128xi32>
    %6 = arith.cmpi ne, %4, %5 : vector<1x128xi32>
    %c0_i32_1 = arith.constant 0 : i32
    %7 = vector.broadcast %c0_i32_1 : i32 to vector<1x128xi32>
    %8 = arith.cmpi slt, %4, %7 : vector<1x128xi32>
    %c0_i32_2 = arith.constant 0 : i32
    %9 = arith.cmpi slt, %2, %c0_i32_2 : i32
    %10 = vector.broadcast %9 : i1 to vector<1x128xi1>
    %11 = vector.broadcast %10 : vector<1x128xi1> to vector<1x128xi1>
    %12 = arith.xori %8, %11 : vector<1x128xi1>
    %13 = arith.andi %12, %6 : vector<1x128xi1>
    %14 = vector.broadcast %2 : i32 to vector<1x128xi32>
    %15 = arith.addi %4, %14 : vector<1x128xi32>
    %16 = arith.select %13, %15, %4 : vector<1x128xi1>, vector<1x128xi32>
    %cst = arith.constant 0.000000e+00 : f32
    %17 = vector.broadcast %cst : f32 to vector<8x128xf32>
    %c0_i32_3 = arith.constant 0 : i32
    %18 = arith.index_cast %c0_i32_3 : i32 to index
    %c0 = arith.constant 0 : index
    %c0_4 = arith.constant 0 : index
    %19 = vector.load %arg1[%18, %c0, %c0_4] : memref<2x8x128xf32, #tpu.memory_space<vmem>>, vector<1x8x128xf32>
    %20 = vector.shape_cast %19 : vector<1x8x128xf32> to vector<8x128xf32>
    %21 = arith.addf %17, %20 : vector<8x128xf32>
    %c1_i32_5 = arith.constant 1 : i32
    %22 = arith.index_cast %c1_i32_5 : i32 to index
    %c0_6 = arith.constant 0 : index
    %c0_7 = arith.constant 0 : index
    %23 = vector.load %arg1[%22, %c0_6, %c0_7] : memref<2x8x128xf32, #tpu.memory_space<vmem>>, vector<1x8x128xf32>
    %24 = vector.shape_cast %23 : vector<1x8x128xf32> to vector<8x128xf32>
    %25 = arith.addf %21, %24 : vector<8x128xf32>
    %c2_i32 = arith.constant 2 : i32
    %cst_8 = arith.constant 0.000000e+00 : f32
    %26 = vector.broadcast %cst_8 : f32 to vector<8x128xf32>
    %c0_i32_9 = arith.constant 0 : i32
    %27 = vector.broadcast %c0_i32_9 : i32 to vector<1x128xi32>
    %28 = arith.cmpi sge, %16, %27 : vector<1x128xi32>
    %c8_i32 = arith.constant 8 : i32
    %29 = vector.broadcast %c8_i32 : i32 to vector<1x128xi32>
    %30 = arith.cmpi slt, %16, %29 : vector<1x128xi32>
    %31 = arith.andi %28, %30 : vector<1x128xi1>
    %cst_10 = arith.constant 0.000000e+00 : f32
    %32 = vector.shape_cast %31 : vector<1x128xi1> to vector<1x128xi1>
    %33 = vector.broadcast %32 : vector<1x128xi1> to vector<8x128xi1>
    %34 = vector.broadcast %cst_10 : f32 to vector<8x128xf32>
    %35 = arith.select %33, %25, %34 : vector<8x128xi1>, vector<8x128xf32>
    %cst_11 = arith.constant dense<0.000000e+00> : vector<8xf32>
    %36 = vector.multi_reduction <add>, %35, %cst_11 [1] : vector<8x128xf32> to vector<8xf32>
    %37 = vector.shape_cast %36 : vector<8xf32> to vector<8x1xf32>
    %cst_12 = arith.constant 7.812500e-03 : f32
    %38 = vector.broadcast %cst_12 : f32 to vector<8x1xf32>
    %39 = arith.mulf %37, %38 : vector<8x1xf32>
    %40 = vector.shape_cast %31 : vector<1x128xi1> to vector<1x128xi1>
    %41 = vector.broadcast %40 : vector<1x128xi1> to vector<8x128xi1>
    %42 = vector.shape_cast %39 : vector<8x1xf32> to vector<8x1xf32>
    %43 = vector.broadcast %42 : vector<8x1xf32> to vector<8x128xf32>
    %44 = arith.select %41, %43, %26 : vector<8x128xi1>, vector<8x128xf32>
    %c8_i32_13 = arith.constant 8 : i32
    %45 = vector.broadcast %c8_i32_13 : i32 to vector<1x128xi32>
    %46 = arith.cmpi sge, %16, %45 : vector<1x128xi32>
    %c16_i32_14 = arith.constant 16 : i32
    %47 = vector.broadcast %c16_i32_14 : i32 to vector<1x128xi32>
    %48 = arith.cmpi slt, %16, %47 : vector<1x128xi32>
    %49 = arith.andi %46, %48 : vector<1x128xi1>
    %cst_15 = arith.constant 0.000000e+00 : f32
    %50 = vector.shape_cast %49 : vector<1x128xi1> to vector<1x128xi1>
    %51 = vector.broadcast %50 : vector<1x128xi1> to vector<8x128xi1>
    %52 = vector.broadcast %cst_15 : f32 to vector<8x128xf32>
    %53 = arith.select %51, %25, %52 : vector<8x128xi1>, vector<8x128xf32>
    %cst_16 = arith.constant dense<0.000000e+00> : vector<8xf32>
    %54 = vector.multi_reduction <add>, %53, %cst_16 [1] : vector<8x128xf32> to vector<8xf32>
    %55 = vector.shape_cast %54 : vector<8xf32> to vector<8x1xf32>
    %cst_17 = arith.constant 7.812500e-03 : f32
    %56 = vector.broadcast %cst_17 : f32 to vector<8x1xf32>
    %57 = arith.mulf %55, %56 : vector<8x1xf32>
    %58 = vector.shape_cast %49 : vector<1x128xi1> to vector<1x128xi1>
    %59 = vector.broadcast %58 : vector<1x128xi1> to vector<8x128xi1>
    %60 = vector.shape_cast %57 : vector<8x1xf32> to vector<8x1xf32>
    %61 = vector.broadcast %60 : vector<8x1xf32> to vector<8x128xf32>
    %62 = arith.select %59, %61, %44 : vector<8x128xi1>, vector<8x128xf32>
    %cst_18 = arith.constant 0.000000e+00 : f32
    %63 = vector.broadcast %cst_18 : f32 to vector<8x128xf32>
    %c0_i32_19 = arith.constant 0 : i32
    %64 = arith.index_cast %c0_i32_19 : i32 to index
    %c0_20 = arith.constant 0 : index
    %c0_21 = arith.constant 0 : index
    %65 = vector.load %arg1[%64, %c0_20, %c0_21] : memref<2x8x128xf32, #tpu.memory_space<vmem>>, vector<1x8x128xf32>
    %66 = vector.shape_cast %65 : vector<1x8x128xf32> to vector<8x128xf32>
    %67 = arith.subf %66, %62 : vector<8x128xf32>
    %68 = arith.mulf %67, %67 : vector<8x128xf32>
    %69 = arith.addf %63, %68 : vector<8x128xf32>
    %c1_i32_22 = arith.constant 1 : i32
    %70 = arith.index_cast %c1_i32_22 : i32 to index
    %c0_23 = arith.constant 0 : index
    %c0_24 = arith.constant 0 : index
    %71 = vector.load %arg1[%70, %c0_23, %c0_24] : memref<2x8x128xf32, #tpu.memory_space<vmem>>, vector<1x8x128xf32>
    %72 = vector.shape_cast %71 : vector<1x8x128xf32> to vector<8x128xf32>
    %73 = arith.subf %72, %62 : vector<8x128xf32>
    %74 = arith.mulf %73, %73 : vector<8x128xf32>
    %75 = arith.addf %69, %74 : vector<8x128xf32>
    %c2_i32_25 = arith.constant 2 : i32
    %c0_26 = arith.constant 0 : index
    %c0_27 = arith.constant 0 : index
    %76 = vector.load %arg2[%c0_26, %c0_27] : memref<8x2xf32, #tpu.memory_space<vmem>>, vector<8x2xf32>
    %c0_28 = arith.constant 0 : index
    %c0_29 = arith.constant 0 : index
    %77 = vector.load %arg3[%c0_28, %c0_29] : memref<8x2xf32, #tpu.memory_space<vmem>>, vector<8x2xf32>
    %cst_30 = arith.constant 0.000000e+00 : f32
    %78 = vector.broadcast %cst_30 : f32 to vector<8x128xf32>
    %cst_31 = arith.constant 0.000000e+00 : f32
    %79 = vector.broadcast %cst_31 : f32 to vector<8x128xf32>
    %cst_32 = arith.constant 0.000000e+00 : f32
    %80 = vector.shape_cast %31 : vector<1x128xi1> to vector<1x128xi1>
    %81 = vector.broadcast %80 : vector<1x128xi1> to vector<8x128xi1>
    %82 = vector.broadcast %cst_32 : f32 to vector<8x128xf32>
    %83 = arith.select %81, %75, %82 : vector<8x128xi1>, vector<8x128xf32>
    %cst_33 = arith.constant dense<0.000000e+00> : vector<8xf32>
    %84 = vector.multi_reduction <add>, %83, %cst_33 [1] : vector<8x128xf32> to vector<8xf32>
    %85 = vector.shape_cast %84 : vector<8xf32> to vector<8x1xf32>
    %cst_34 = arith.constant 7.812500e-03 : f32
    %86 = vector.broadcast %cst_34 : f32 to vector<8x1xf32>
    %87 = arith.mulf %85, %86 : vector<8x1xf32>
    %cst_35 = arith.constant 9.99999974E-6 : f32
    %88 = vector.broadcast %cst_35 : f32 to vector<8x1xf32>
    %89 = arith.addf %87, %88 : vector<8x1xf32>
    %90 = math.rsqrt %89 : vector<8x1xf32>
    %91 = vector.extract_strided_slice %76 {offsets = [0, 0], sizes = [8, 1], strides = [1, 1]} : vector<8x2xf32> to vector<8x1xf32>
    %92 = arith.mulf %91, %90 : vector<8x1xf32>
    %93 = vector.extract_strided_slice %77 {offsets = [0, 0], sizes = [8, 1], strides = [1, 1]} : vector<8x2xf32> to vector<8x1xf32>
    %94 = arith.mulf %39, %92 : vector<8x1xf32>
    %95 = arith.subf %93, %94 : vector<8x1xf32>
    %96 = vector.shape_cast %31 : vector<1x128xi1> to vector<1x128xi1>
    %97 = vector.broadcast %96 : vector<1x128xi1> to vector<8x128xi1>
    %98 = vector.shape_cast %92 : vector<8x1xf32> to vector<8x1xf32>
    %99 = vector.broadcast %98 : vector<8x1xf32> to vector<8x128xf32>
    %100 = arith.select %97, %99, %78 : vector<8x128xi1>, vector<8x128xf32>
    %101 = vector.shape_cast %31 : vector<1x128xi1> to vector<1x128xi1>
    %102 = vector.broadcast %101 : vector<1x128xi1> to vector<8x128xi1>
    %103 = vector.shape_cast %95 : vector<8x1xf32> to vector<8x1xf32>
    %104 = vector.broadcast %103 : vector<8x1xf32> to vector<8x128xf32>
    %105 = arith.select %102, %104, %79 : vector<8x128xi1>, vector<8x128xf32>
    %cst_36 = arith.constant 0.000000e+00 : f32
    %106 = vector.shape_cast %49 : vector<1x128xi1> to vector<1x128xi1>
    %107 = vector.broadcast %106 : vector<1x128xi1> to vector<8x128xi1>
    %108 = vector.broadcast %cst_36 : f32 to vector<8x128xf32>
    %109 = arith.select %107, %75, %108 : vector<8x128xi1>, vector<8x128xf32>
    %cst_37 = arith.constant dense<0.000000e+00> : vector<8xf32>
    %110 = vector.multi_reduction <add>, %109, %cst_37 [1] : vector<8x128xf32> to vector<8xf32>
    %111 = vector.shape_cast %110 : vector<8xf32> to vector<8x1xf32>
    %cst_38 = arith.constant 7.812500e-03 : f32
    %112 = vector.broadcast %cst_38 : f32 to vector<8x1xf32>
    %113 = arith.mulf %111, %112 : vector<8x1xf32>
    %cst_39 = arith.constant 9.99999974E-6 : f32
    %114 = vector.broadcast %cst_39 : f32 to vector<8x1xf32>
    %115 = arith.addf %113, %114 : vector<8x1xf32>
    %116 = math.rsqrt %115 : vector<8x1xf32>
    %117 = vector.extract_strided_slice %76 {offsets = [0, 1], sizes = [8, 1], strides = [1, 1]} : vector<8x2xf32> to vector<8x1xf32>
    %118 = arith.mulf %117, %116 : vector<8x1xf32>
    %119 = vector.extract_strided_slice %77 {offsets = [0, 1], sizes = [8, 1], strides = [1, 1]} : vector<8x2xf32> to vector<8x1xf32>
    %120 = arith.mulf %57, %118 : vector<8x1xf32>
    %121 = arith.subf %119, %120 : vector<8x1xf32>
    %122 = vector.shape_cast %49 : vector<1x128xi1> to vector<1x128xi1>
    %123 = vector.broadcast %122 : vector<1x128xi1> to vector<8x128xi1>
    %124 = vector.shape_cast %118 : vector<8x1xf32> to vector<8x1xf32>
    %125 = vector.broadcast %124 : vector<8x1xf32> to vector<8x128xf32>
    %126 = arith.select %123, %125, %100 : vector<8x128xi1>, vector<8x128xf32>
    %127 = vector.shape_cast %49 : vector<1x128xi1> to vector<1x128xi1>
    %128 = vector.broadcast %127 : vector<1x128xi1> to vector<8x128xi1>
    %129 = vector.shape_cast %121 : vector<8x1xf32> to vector<8x1xf32>
    %130 = vector.broadcast %129 : vector<8x1xf32> to vector<8x128xf32>
    %131 = arith.select %128, %130, %105 : vector<8x128xi1>, vector<8x128xf32>
    %c0_i32_40 = arith.constant 0 : i32
    %132 = arith.index_cast %c0_i32_40 : i32 to index
    %c0_41 = arith.constant 0 : index
    %c0_42 = arith.constant 0 : index
    %133 = vector.load %arg1[%132, %c0_41, %c0_42] : memref<2x8x128xf32, #tpu.memory_space<vmem>>, vector<1x8x128xf32>
    %134 = vector.shape_cast %133 : vector<1x8x128xf32> to vector<8x128xf32>
    %135 = arith.mulf %126, %134 : vector<8x128xf32>
    %136 = arith.addf %135, %131 : vector<8x128xf32>
    %137 = arith.index_cast %c0_i32_40 : i32 to index
    %c0_43 = arith.constant 0 : index
    %c0_44 = arith.constant 0 : index
    %138 = vector.load %arg4[%137, %c0_43, %c0_44] : memref<2x8x128xf32, #tpu.memory_space<vmem>>, vector<1x8x128xf32>
    %139 = vector.shape_cast %138 : vector<1x8x128xf32> to vector<8x128xf32>
    %140 = vector.shape_cast %136 : vector<8x128xf32> to vector<1x8x128xf32>
    tpu.vector_store %arg4[%137, %c0_43, %c0_44], %140 {strides = array<i32>} : memref<2x8x128xf32, #tpu.memory_space<vmem>>, vector<1x8x128xf32>,
    %c1_i32_45 = arith.constant 1 : i32
    %141 = arith.index_cast %c1_i32_45 : i32 to index
    %c0_46 = arith.constant 0 : index
    %c0_47 = arith.constant 0 : index
    %142 = vector.load %arg1[%141, %c0_46, %c0_47] : memref<2x8x128xf32, #tpu.memory_space<vmem>>, vector<1x8x128xf32>
    %143 = vector.shape_cast %142 : vector<1x8x128xf32> to vector<8x128xf32>
    %144 = arith.mulf %126, %143 : vector<8x128xf32>
    %145 = arith.addf %144, %131 : vector<8x128xf32>
    %146 = arith.index_cast %c1_i32_45 : i32 to index
    %c0_48 = arith.constant 0 : index
    %c0_49 = arith.constant 0 : index
    %147 = vector.load %arg4[%146, %c0_48, %c0_49] : memref<2x8x128xf32, #tpu.memory_space<vmem>>, vector<1x8x128xf32>
    %148 = vector.shape_cast %147 : vector<1x8x128xf32> to vector<8x128xf32>
    %149 = vector.shape_cast %145 : vector<8x128xf32> to vector<1x8x128xf32>
    tpu.vector_store %arg4[%146, %c0_48, %c0_49], %149 {strides = array<i32>} : memref<2x8x128xf32, #tpu.memory_space<vmem>>, vector<1x8x128xf32>,
    %c2_i32_50 = arith.constant 2 : i32
    return
  }
  func.func @transform_0(%arg0: i32) -> (i32, i32, i32) {
    %c0_i32 = arith.constant 0 : i32
    %c0_i32_0 = arith.constant 0 : i32
    %c0_i32_1 = arith.constant 0 : i32
    return %c0_i32, %arg0, %c0_i32_0 : i32, i32, i32
  }
  func.func @transform_1(%arg0: i32) -> (i32, i32) {
    %c0_i32 = arith.constant 0 : i32
    %c0_i32_0 = arith.constant 0 : i32
    return %arg0, %c0_i32 : i32, i32
  }
  func.func @transform_2(%arg0: i32) -> (i32, i32) {
    %c0_i32 = arith.constant 0 : i32
    %c0_i32_0 = arith.constant 0 : i32
    return %arg0, %c0_i32 : i32, i32
  }
  func.func @transform_3(%arg0: i32) -> (i32, i32, i32) {
    %c0_i32 = arith.constant 0 : i32
    %c0_i32_0 = arith.constant 0 : i32
    %c0_i32_1 = arith.constant 0 : i32
    return %c0_i32, %arg0, %c0_i32_0 : i32, i32, i32
  }
}

</mosaic_0001>

<bundles_post_ra>
// kernel: tpu_custom_call.1
= control target key start
LH: loop header
LB: loop body
LE: loop exit
PB: predicated region body
PF: predicated region fallthrough
CT: control target
= control target key end

     0   :  { %v15_v0 = vlaneseq  ;;  %s268_s0 = inlined_call_operand.vmem [shape: f32[2,8,128], index: 0, kind: input, shape index: {}]   ;;  %s269_s1 = inlined_call_operand.vmem [shape: f32[8,2], index: 1, kind: input, shape index: {}]   ;;  %s270_s2 = inlined_call_operand.vmem [shape: f32[8,2], index: 2, kind: input, shape index: {}]   ;;  %s271_s3 = inlined_call_operand.hbm [shape: f32[2,8,128], index: 3, kind: output, shape index: {}]  }
   0x1   :  { %v218_v1 = vld [vmem:[%s268_s0] sm:$0xff]  ;;  %v223_v2 = vld [vmem:[%s268_s0 + $0x8] sm:$0xff] }
   0x2   :  { %8 = vsyncpa [#allocation3], 0  ;;  %v16_v3 = vand.u32 127, %v15_v0  ;;  %v33_v4 = vadd.f32 %v223_v2, %v218_v1  ;;  %v190_v23 = vmov 0   ;;  %v191_v26 = vmov 1   ;;  %v60_v38 = vld [vmem:[%s269_s1] sm:$0xff] }
   0x3   :  { %155 = vset.pattern.permute.xlu2 %v190_v23  ;;  %157 = vset.pattern.permute.xlu0 %v190_v23  ;;  %v61_v44 = vld [vmem:[%s270_s2] sm:$0xff]  ;;  %s192_s1 = smov [#allocation2]   ;;  %s136_s21 = sshll.u32 %s271_s3, 4  ;;  %s137_s21 = int_to_ptr.hbm [resolvable:$true] %s136_s21 }
   0x4   :  { %v21_v5 = vand.u32 15, %v16_v3  ;;  %158 = vset.pattern.permute.xlu1 %v191_v26  ;;  %s134_s2 = sshll.u32 %s192_s1, 4  ;;  %s193_s22 = smov 128   ;;  %s135_s2 = int_to_ptr.vmem [resolvable:$true] %s134_s2 }
   0x5   :  { %s194_s23 = smov 8  }
   0x6   :  { %vm227_vm0 = vcmp.lt.s32.totalorder %v21_v5, 8  ;;  %vm233_vm1 = vcmp.ge.s32.totalorder %v21_v5, 8 }
   0x7   :  { %v39_v7 = vsel %vm227_vm0, %v33_v4, 0.0  ;;  %v49_v9 = vsel %vm233_vm1, %v33_v4, 0.0 }
   0x8   :  { %40 = vadd.xlane.f32.xlu0 %v39_v7 }
  0x10   :  { %50 = vadd.xlane.f32.xlu0 %v49_v9 }
  0x7b   :  { %v41_v10 = vpop.xlane.xlu0 %40 }
  0x7c   :  { %v42_v11 = vmul.f32 0.0078125, %v41_v10 }
  0x7e   :  { %v43_v14 = vsel %vm227_vm0, %v42_v11, 0.0 }
  0x83   :  { %v51_v12 = vpop.xlane.xlu0 %50 }
  0x84   :  { %v52_v13 = vmul.f32 0.0078125, %v51_v12 }
  0x86   :  { %v53_v15 = vsel %vm233_vm1, %v52_v13, %v43_v14 }
  0x87   :  { %v54_v16 = vsub.f32 %v218_v1, %v53_v15  ;;  %v57_v17 = vsub.f32 %v223_v2, %v53_v15 }
  0x89   :  { %v55_v18 = vmul.f32 %v54_v16, %v54_v16  ;;  %v58_v19 = vmul.f32 %v57_v17, %v57_v17 }
  0x8b   :  { %v59_v20 = vadd.f32 %v58_v19, %v55_v18 }
  0x8d   :  { %v62_v21 = vsel %vm227_vm0, %v59_v20, 0.0  ;;  %v92_v22 = vsel %vm233_vm1, %v59_v20, 0.0 }
  0x8e   :  { %63 = vadd.xlane.f32.xlu1 %v62_v21 }
  0x96   :  { %93 = vadd.xlane.f32.xlu1 %v92_v22 }
 0x101   :  { %v64_v24 = vpop.xlane.xlu1 %63 }
 0x102   :  { %v65_v25 = vmul.f32 0.0078125, %v64_v24 }
 0x104   :  { %v66_v27 = vadd.f32 1e-05, %v65_v25 }
 0x106   :  { %160 = vrsqrt.f32 %v66_v27  ;;  %vm73_vm3 = vweird.f32 %v66_v27 }
 0x109   :  { %v94_v28 = vpop.xlane.xlu1 %93 }
 0x10a   :  { %v95_v29 = vmul.f32 0.0078125, %v94_v28 }
 0x10c   :  { %v161_v30 = vpop.eup %160  ;;  %v96_v31 = vadd.f32 1e-05, %v95_v29 }
 0x10d   :  { %v68_v32 = vmul.f32 %v161_v30, %v66_v27  ;;  %vm74_vm2 = vweird.f32 %v161_v30 }
 0x10e   :  { %162 = vrsqrt.f32 %v96_v31  ;;  %vm75_vm4 = vmor %vm73_vm3, %vm74_vm2  ;;  %vm103_vm6 = vweird.f32 %v96_v31 }
 0x10f   :  { %v69_v33 = vmul.f32 %v161_v30, %v68_v32 }
 0x111   :  { %v70_v34 = vmul.f32 0.5, %v69_v33 }
 0x113   :  { %v71_v35 = vsub.f32 1.5, %v70_v34 }
 0x114   :  { %v163_v36 = vpop.eup %162 }
 0x115   :  { %v98_v37 = vmul.f32 %v163_v36, %v96_v31  ;;  %v72_v39 = vmul.f32 %v161_v30, %v71_v35  ;;  %vm104_vm5 = vweird.f32 %v163_v36 }
 0x116   :  { %vm105_vm7 = vmor %vm103_vm6, %vm104_vm5 }
 0x117   :  { %v99_v40 = vmul.f32 %v163_v36, %v98_v37  ;;  %v76_v41 = vsel %vm75_vm4, %v161_v30, %v72_v39 }
 0x118   :  { %v77_v42 = vmul.f32 %v76_v41, %v60_v38 }
 0x119   :  { %v100_v43 = vmul.f32 0.5, %v99_v40 }
 0x11a   :  { %82 = vperm.xlu2 %155, %v77_v42   ;;  %v78_v45 = vmul.f32 %v77_v42, %v42_v11 }
 0x11b   :  { %v101_v46 = vsub.f32 1.5, %v100_v43 }
 0x11c   :  { %v79_v47 = vsub.f32 %v61_v44, %v78_v45 }
 0x11d   :  { %v102_v48 = vmul.f32 %v163_v36, %v101_v46 }
 0x11e   :  { %88 = vperm.xlu0 %157, %v79_v47  }
 0x11f   :  { %v106_v49 = vsel %vm105_vm7, %v163_v36, %v102_v48 }
 0x120   :  { %v107_v50 = vmul.f32 %v106_v49, %v60_v38 }
 0x122   :  { %v108_v51 = vmul.f32 %v107_v50, %v52_v13  ;;  %156 = vset.pattern.permute.xlu2 %v191_v26 }
 0x123   :  { %112 = vperm.xlu2 %156, %v107_v50  }
 0x124   :  { %v109_v52 = vsub.f32 %v61_v44, %v108_v51 }
 0x126   :  { %118 = vperm.xlu1 %158, %v109_v52   ;;  %159 = vset.pattern.permute.xlu0 %v191_v26 }
 0x174   :  { %v83_v53 = vpop.permute.xlu2 %82 }
 0x175   :  { %v85_v55 = vsel %vm227_vm0, %v83_v53, 0.0 }
 0x17d   :  { %v113_v54 = vpop.permute.xlu2 %112 }
 0x17e   :  { %v115_v56 = vsel %vm233_vm1, %v113_v54, %v85_v55 }
 0x17f   :  { %v122_v58 = vmul.f32 %v115_v56, %v218_v1  ;;  %v126_v59 = vmul.f32 %v223_v2, %v115_v56 }
 0x190   :  { %v89_v57 = vpop.permute.xlu0 %88 }
 0x191   :  { %v91_v60 = vsel %vm227_vm0, %v89_v57, 0.0 }
 0x198   :  { %v119_v61 = vpop.permute.xlu1 %118 }
 0x199   :  { %v121_v62 = vsel %vm233_vm1, %v119_v61, %v91_v60 }
 0x19a   :  { %v123_v63 = vadd.f32 %v122_v58, %v121_v62  ;;  %v127_v0 = vadd.f32 %v126_v59, %v121_v62 }
 0x19c   :  { %124 = vst [vmem:[#allocation2] sm:$0xff] %v123_v63 }
 0x19d   :  { %129 = vst [vmem:[#allocation2 + $0x8] sm:$0xff] %v127_v0 }
 0x19e   :  { %142 = dma.vmem_to_hbm [thread:$0]  %s135_s2, 256, %s137_s21, [#allocation3], %s193_s22, %s193_s22, %s194_s23  }
 0x19f   :  { %188 = dma.done.wait [#allocation3], 256  }
 0x1a0   :  { %189 = vsyncadd [#allocation3], 4294967040 }
 0x1a1   :  { %147 = vsyncpa [#allocation3], 1 }

</bundles_post_ra>
